<compile_context>
chip_gen: v5e
topology: v5e:2x2
jax: 0.10.0
libtpu: 0.0.40
codegen_flags: <defaults>
</compile_context>

<pallas_src>
import jax
import jax.numpy as jnp
from jax.experimental import pallas as pl
from jax.experimental.pallas import tpu as pltpu


def mlp_kernel(x_ref, w1_ref, b1_ref, w2_ref, b2_ref, o_ref):
    # f32 x tile read from HBM; cast to bf16 in-kernel for the MXU.
    x = x_ref[...].astype(jnp.bfloat16)
    # fc1 on the MXU: bf16 inputs, f32 accumulate.
    h = jnp.dot(x, w1_ref[...], preferred_element_type=jnp.float32)
    # Bias add + ReLU in f32 on the VPU (padded H columns have zero bias and
    # zero weights, so they stay zero through ReLU and contribute nothing).
    h = jnp.maximum(h + b1_ref[...], 0.0)
    # fc2: intentional f32->bf16 downcast of the activation for the MXU input;
    # f32 accumulate.
    y = jnp.dot(h.astype(jnp.bfloat16), w2_ref[...],
                preferred_element_type=jnp.float32)
    o_ref[...] = (y + b2_ref[...]).astype(o_ref.dtype)


def _round_up(n, m):
    return ((n + m - 1) // m) * m


def prepare_params(w1, b1, w2, b2):
    """One-time pad/cast of parameters (done at init, not per call).

    w1: (D, H), b1: (H,) or (1, H), w2: (H, O), b2: (O,) or (1, O).
    Only the hidden dim is lane-padded to 128; padded weight rows/cols and
    padded bias entries are zero, so results are unchanged.
    """
    D, H = w1.shape
    O = w2.shape[1]
    Hp = _round_up(H, 128)
    bf16 = jnp.bfloat16
    w1p = jnp.zeros((D, Hp), bf16).at[:, :H].set(w1.astype(bf16))
    b1p = jnp.zeros((1, Hp), jnp.float32).at[:, :H].set(
        b1.astype(jnp.float32).reshape(1, H))
    w2p = jnp.zeros((Hp, O), bf16).at[:H, :].set(w2.astype(bf16))
    b2p = b2.astype(jnp.float32).reshape(1, O)
    return w1p, b1p, w2p, b2p


def mlp_forward(x, w1p, b1p, w2p, b2p, *, block_b=1024):
    """x: (B, D) f32; params from prepare_params. Returns (B, O) f32."""
    B, D = x.shape
    Hp = w1p.shape[1]
    O = w2p.shape[1]
    SUB = 8

    # Batch tile: sublane multiple of 8, capped at block_b, and capped so the
    # grid has >= 2 steps when B allows (megacore sharding on v7x).
    TB = min(block_b, _round_up(B, SUB))
    if B > SUB:
        TB = max(SUB, min(TB, _round_up((B + 1) // 2, SUB)))
    Bp = _round_up(B, TB)

    # Batch-only padding of x (no lane padding); skipped entirely when B
    # already divides into whole tiles.
    xb = x if Bp == B else jnp.zeros((Bp, D), x.dtype).at[:B].set(x)

    # Modest VMEM budget: double-buffered x/out tiles + resident weights,
    # with generous headroom; well under v7x's 64 MiB physical VMEM.
    tile_bytes = 2 * (TB * D * 4 + TB * O * 4)
    weight_bytes = (w1p.size + w2p.size) * 2 + (b1p.size + b2p.size) * 4
    vmem_limit = int(min(32 * 1024 * 1024,
                         max(4 * 1024 * 1024, 4 * (tile_bytes + weight_bytes))))

    out = pl.pallas_call(
        mlp_kernel,
        out_shape=jax.ShapeDtypeStruct((Bp, O), jnp.float32),
        grid=(Bp // TB,),
        in_specs=[
            pl.BlockSpec((TB, D), lambda i: (i, 0)),   # x tile marches over B
            pl.BlockSpec((D, Hp), lambda i: (0, 0)),   # weights VMEM-resident
            pl.BlockSpec((1, Hp), lambda i: (0, 0)),
            pl.BlockSpec((Hp, O), lambda i: (0, 0)),
            pl.BlockSpec((1, O), lambda i: (0, 0)),
        ],
        out_specs=pl.BlockSpec((TB, O), lambda i: (i, 0)),  # unpadded (B, O)
        compiler_params=pltpu.CompilerParams(
            dimension_semantics=("parallel",),   # shard B across TCs (v7x)
            vmem_limit_bytes=vmem_limit,
        ),
    )(xb, w1p, b1p, w2p, b2p)

    return out if Bp == B else out[:B]


def init_params(key, fc_input_dim, fc_hidden_dim, fc_output_dim):
    # Mirrors nn.Linear default init: U(-1/sqrt(fan_in), 1/sqrt(fan_in)).
    k1, k2, k3, k4 = jax.random.split(key, 4)
    bound1 = 1.0 / jnp.sqrt(fc_input_dim)
    bound2 = 1.0 / jnp.sqrt(fc_hidden_dim)
    w1 = jax.random.uniform(k1, (fc_input_dim, fc_hidden_dim),
                            jnp.float32, -bound1, bound1)
    b1 = jax.random.uniform(k2, (fc_hidden_dim,), jnp.float32, -bound1, bound1)
    w2 = jax.random.uniform(k3, (fc_hidden_dim, fc_output_dim),
                            jnp.float32, -bound2, bound2)
    b2 = jax.random.uniform(k4, (fc_output_dim,), jnp.float32, -bound2, bound2)
    return w1, b1, w2, b2


def _check(out, x, w1, b1, w2, b2):
    # f32 reference (same math as the PyTorch module). Kernel uses bf16 MXU
    # inputs with f32 accumulation -> bf16-appropriate tolerance.
    ref_f32 = jnp.maximum(x @ w1 + b1[None, :], 0.0) @ w2 + b2[None, :]
    assert jnp.allclose(out, ref_f32, atol=3e-2, rtol=3e-2), (
        float(jnp.max(jnp.abs(out - ref_f32))))
    # Tighter check against a reference applying the same bf16 casts.
    xb, w1b, w2b = (a.astype(jnp.bfloat16) for a in (x, w1, w2))
    h_ref = jnp.maximum(
        jnp.dot(xb, w1b, preferred_element_type=jnp.float32) + b1[None, :], 0.0)
    ref_bf16 = jnp.dot(h_ref.astype(jnp.bfloat16), w2b,
                       preferred_element_type=jnp.float32) + b2[None, :]
    assert jnp.allclose(out, ref_bf16, atol=1e-3, rtol=1e-3), (
        float(jnp.max(jnp.abs(out - ref_bf16))))


if __name__ == "__main__":
    fc_input_dim, fc_hidden_dim, fc_output_dim = 32, 64, 16
    batch = 8

    key = jax.random.PRNGKey(0)
    kx, kp, kx2 = jax.random.split(key, 3)
    x = jax.random.normal(kx, (batch, fc_input_dim), jnp.float32)
    w1, b1, w2, b2 = init_params(kp, fc_input_dim, fc_hidden_dim, fc_output_dim)

    # One-time parameter pad/cast, jitted forward with static block size.
    params = prepare_params(w1, b1, w2, b2)
    fwd = jax.jit(mlp_forward, static_argnames=("block_b",))

    out = jax.block_until_ready(fwd(x, *params))
    assert out.shape == (batch, fc_output_dim)
    _check(out, x, w1, b1, w2, b2)

    # Exercise the multi-tile + batch-padding path (grid >= 2, B % TB != 0).
    batch2 = 200
    x2 = jax.random.normal(kx2, (batch2, fc_input_dim), jnp.float32)
    out2 = jax.block_until_ready(fwd(x2, *params))
    assert out2.shape == (batch2, fc_output_dim)
    _check(out2, x2, w1, b1, w2, b2)

    print("KERNEL_OK")
</pallas_src>

<mosaic_0001>
module attributes {stable_mosaic.version = 11 : i64} {
  func.func @mlp_kernel(%arg0: i32, %arg1: memref<8x32xf32, #tpu.memory_space<vmem>>, %arg2: memref<32x128xbf16, #tpu.memory_space<vmem>>, %arg3: memref<1x128xf32, #tpu.memory_space<vmem>>, %arg4: memref<128x16xbf16, #tpu.memory_space<vmem>>, %arg5: memref<1x16xf32, #tpu.memory_space<vmem>>, %arg6: memref<8x16xf32, #tpu.memory_space<vmem>>) attributes {dimension_semantics = [#tpu.dimension_semantics<parallel>], iteration_bounds = array<i64: 1>, scalar_prefetch = 0 : i64, scratch_operands = 0 : i64, tpu.core_type = #tpu.core_type<tc>, window_params = [{transform_indices = @transform_0, window_bounds = array<i64: 8, 32>}, {pipeline_mode = #tpu.pipeline_mode<synchronous>, transform_indices = @transform_1, window_bounds = array<i64: 32, 128>}, {pipeline_mode = #tpu.pipeline_mode<synchronous>, transform_indices = @transform_2, window_bounds = array<i64: 1, 128>}, {pipeline_mode = #tpu.pipeline_mode<synchronous>, transform_indices = @transform_3, window_bounds = array<i64: 128, 16>}, {pipeline_mode = #tpu.pipeline_mode<synchronous>, transform_indices = @transform_4, window_bounds = array<i64: 1, 16>}, {transform_indices = @transform_5, window_bounds = array<i64: 8, 16>}]} {
    %c0 = arith.constant 0 : index
    %c0_0 = arith.constant 0 : index
    %0 = vector.load %arg1[%c0, %c0_0] : memref<8x32xf32, #tpu.memory_space<vmem>>, vector<8x32xf32>
    %1 = arith.truncf %0 : vector<8x32xf32> to vector<8x32xbf16>
    %c0_1 = arith.constant 0 : index
    %c0_2 = arith.constant 0 : index
    %2 = vector.load %arg2[%c0_1, %c0_2] : memref<32x128xbf16, #tpu.memory_space<vmem>>, vector<32x128xbf16>
    %cst = arith.constant dense<0.000000e+00> : vector<8x128xf32>
    %3 = tpu.matmul %1, %2, %cst {dimension_numbers = #tpu.dot_dimension_numbers<[1], [0], [0], [1], [0, 0, 1, 1], [], []>} : vector<8x32xbf16>, vector<32x128xbf16>, vector<8x128xf32> -> vector<8x128xf32>
    %c0_3 = arith.constant 0 : index
    %c0_4 = arith.constant 0 : index
    %4 = vector.load %arg3[%c0_3, %c0_4] : memref<1x128xf32, #tpu.memory_space<vmem>>, vector<1x128xf32>
    %5 = vector.broadcast %4 : vector<1x128xf32> to vector<8x128xf32>
    %6 = arith.addf %3, %5 : vector<8x128xf32>
    %cst_5 = arith.constant 0.000000e+00 : f32
    %7 = vector.broadcast %cst_5 : f32 to vector<8x128xf32>
    %8 = arith.maximumf %6, %7 : vector<8x128xf32>
    %9 = arith.truncf %8 : vector<8x128xf32> to vector<8x128xbf16>
    %c0_6 = arith.constant 0 : index
    %c0_7 = arith.constant 0 : index
    %10 = vector.load %arg4[%c0_6, %c0_7] : memref<128x16xbf16, #tpu.memory_space<vmem>>, vector<128x16xbf16>
    %cst_8 = arith.constant dense<0.000000e+00> : vector<8x16xf32>
    %11 = tpu.matmul %9, %10, %cst_8 {dimension_numbers = #tpu.dot_dimension_numbers<[1], [0], [0], [1], [0, 0, 1, 1], [], []>} : vector<8x128xbf16>, vector<128x16xbf16>, vector<8x16xf32> -> vector<8x16xf32>
    %c0_9 = arith.constant 0 : index
    %c0_10 = arith.constant 0 : index
    %12 = vector.load %arg5[%c0_9, %c0_10] : memref<1x16xf32, #tpu.memory_space<vmem>>, vector<1x16xf32>
    %13 = vector.broadcast %12 : vector<1x16xf32> to vector<8x16xf32>
    %14 = arith.addf %11, %13 : vector<8x16xf32>
    %c0_11 = arith.constant 0 : index
    %c0_12 = arith.constant 0 : index
    %15 = vector.load %arg6[%c0_11, %c0_12] : memref<8x16xf32, #tpu.memory_space<vmem>>, vector<8x16xf32>
    tpu.vector_store %arg6[%c0_11, %c0_12], %14 {strides = array<i32>} : memref<8x16xf32, #tpu.memory_space<vmem>>, vector<8x16xf32>,
    return
  }
  func.func @transform_0(%arg0: i32) -> (i32, i32) {
    %c0_i32 = arith.constant 0 : i32
    %c0_i32_0 = arith.constant 0 : i32
    return %arg0, %c0_i32 : i32, i32
  }
  func.func @transform_1(%arg0: i32) -> (i32, i32) {
    %c0_i32 = arith.constant 0 : i32
    %c0_i32_0 = arith.constant 0 : i32
    %c0_i32_1 = arith.constant 0 : i32
    return %c0_i32, %c0_i32_0 : i32, i32
  }
  func.func @transform_2(%arg0: i32) -> (i32, i32) {
    %c0_i32 = arith.constant 0 : i32
    %c0_i32_0 = arith.constant 0 : i32
    %c0_i32_1 = arith.constant 0 : i32
    return %c0_i32, %c0_i32_0 : i32, i32
  }
  func.func @transform_3(%arg0: i32) -> (i32, i32) {
    %c0_i32 = arith.constant 0 : i32
    %c0_i32_0 = arith.constant 0 : i32
    %c0_i32_1 = arith.constant 0 : i32
    return %c0_i32, %c0_i32_0 : i32, i32
  }
  func.func @transform_4(%arg0: i32) -> (i32, i32) {
    %c0_i32 = arith.constant 0 : i32
    %c0_i32_0 = arith.constant 0 : i32
    %c0_i32_1 = arith.constant 0 : i32
    return %c0_i32, %c0_i32_0 : i32, i32
  }
  func.func @transform_5(%arg0: i32) -> (i32, i32) {
    %c0_i32 = arith.constant 0 : i32
    %c0_i32_0 = arith.constant 0 : i32
    return %arg0, %c0_i32 : i32, i32
  }
}

</mosaic_0001>

<bundles_post_ra>
// kernel: mlp_forward.1
= control target key start
LH: loop header
LB: loop body
LE: loop exit
PB: predicated region body
PF: predicated region fallthrough
CT: control target
= control target key end

     0   :  { %s315_s0 = inlined_call_operand.vmem [shape: f32[8,32], index: 0, kind: input, shape index: {}]   ;;  %s316_s1 = inlined_call_operand.vmem [shape: bf16[32,128], index: 1, kind: input, shape index: {}]   ;;  %s317_s2 = inlined_call_operand.vmem [shape: f32[1,128], index: 2, kind: input, shape index: {}]   ;;  %s318_s3 = inlined_call_operand.vmem [shape: bf16[128,16], index: 3, kind: input, shape index: {}]   ;;  %s319_s4 = inlined_call_operand.vmem [shape: f32[1,16], index: 4, kind: input, shape index: {}]   ;;  %s320_s5 = inlined_call_operand.hbm [shape: f32[8,16], index: 5, kind: output, shape index: {}]  }
   0x1   :  { %v204_v0 = vld [vmem:[%s316_s1 + $0x8] sm:$0xff]  ;;  %v212_v1 = vld [vmem:[%s318_s3 + $0x38] sm:$0xff]  ;;  %v203_v2 = vld [vmem:[%s316_s1] sm:$0xff] }
   0x2   :  { %54 = vmatpush.bf16.msra.mxu0 %v204_v0  ;;  %v22_v3 = vld [vmem:[%s315_s0] sm:$0xff]  ;;  %131 = vmatpush.bf16.msra.mxu1 %v212_v1  ;;  %v211_v4 = vld [vmem:[%s318_s3 + $0x30] sm:$0xff] }
   0x3   :  { %10 = vsyncpa [#allocation3], 0  ;;  %v23_v5 = vpack.c.bf16 %v22_v3, %v22_v3  ;;  %vm44_vm0 = vcmask 261120   ;;  %v210_v6 = vld [vmem:[%s318_s3 + $0x28] sm:$0xff]  ;;  %v209_v7 = vld [vmem:[%s318_s3 + $0x20] sm:$0xff]  ;;  %s242_s17 = smov [#allocation2]  }
   0x4   :  { %v208_v8 = vld [vmem:[%s318_s3 + $0x18] sm:$0xff]  ;;  %v207_v9 = vld [vmem:[%s318_s3 + $0x10] sm:$0xff]  ;;  %v206_v10 = vld [vmem:[%s318_s3 + $0x8] sm:$0xff]  ;;  %s151_s18 = sshll.u32 %s242_s17, 4  ;;  %vm144_vm1 = vcmask 130048   ;;  %s152_s18 = int_to_ptr.vmem [resolvable:$true] %s151_s18 }
   0x5   :  { %v205_v11 = vld [vmem:[%s318_s3] sm:$0xff]  ;;  %s153_s3 = sshll.u32 %s320_s5, 4  ;;  %s154_s3 = int_to_ptr.hbm [resolvable:$true] %s153_s3 }
   0x6   :  { %55 = vmatpush.bf16.msra.mxu0 %v203_v2  ;;  %132 = vmatpush.bf16.msra.mxu1 %v211_v4  ;;  %v214_v12 = vld [vmem:[%s317_s2] ss:$0 sm:$0xff] }
   0x7   :  { %v215_v18 = vld [vmem:[%s319_s4] ss:$0 sm:$0xff] }
   0x9   :  { %170 = vmatmul.msk.bf16.vlgmr.msra.gmra.mxu0 %vm44_vm0, %v23_v5 }
   0xa   :  { %133 = vmatpush.bf16.msra.mxu1 %v210_v6 }
   0xe   :  { %134 = vmatpush.bf16.msra.mxu1 %v209_v7 }
  0x12   :  { %135 = vmatpush.bf16.msra.mxu1 %v208_v8 }
  0x16   :  { %136 = vmatpush.bf16.msra.mxu1 %v207_v9 }
  0x1a   :  { %137 = vmatpush.bf16.msra.mxu1 %v206_v10 }
  0x1e   :  { %138 = vmatpush.bf16.msra.mxu1 %v205_v11 }
  0x86   :  { %v57_v13 = vpop.f32.mrf.mxu0 }
  0x87   :  { %v58_v14 = vadd.f32 %v214_v12, %v57_v13 }
  0x89   :  { %v61_v15 = vmax.f32 %v58_v14, 0.0 }
  0x8b   :  { %v62_v16 = vpack.c.bf16 %v61_v15, %v61_v15 }
  0x8d   :  { %139 = vmatmul.bf16.vlgmr.msra.gmra.mxu1 %v62_v16 }
  0x8e   :  { %v59_v17 = vpop.f32.mrf.mxu0 }
 0x10a   :  { %v140_v19 = vpop.f32.mrf.mxu1 }
 0x10b   :  { %v141_v20 = vadd.f32 %v215_v18, %v140_v19 }
 0x10d   :  { %145 = vst.msk [vmem:[#allocation2] sm:$0xff] %vm144_vm1, %v141_v20 }
 0x10e   :  { %156 = dma.vmem_to_hbm [thread:$0]  %s152_s18, 128, %s154_s3, [#allocation3]  }
 0x112   :  { %v142_v21 = vpop.f32.mrf.mxu1 }
 0x113   :  { %240 = dma.done.wait [#allocation3], 128  }
 0x114   :  { %241 = vsyncadd [#allocation3], 4294967168 }
 0x115   :  { %161 = vsyncpa [#allocation3], 1 }

</bundles_post_ra>
